<compile_context>
chip_gen: v5e
topology: v5e:2x2
jax: 0.10.0
libtpu: 0.0.40
codegen_flags: <defaults>
</compile_context>

<pallas_src>
import jax
import jax.numpy as jnp
from jax.experimental import pallas as pl
from jax.experimental.pallas import tpu as pltpu


_IN_PAD = 128    # input feature dim 100 padded to 128 lanes
_H_PAD = 256     # hidden width 200 padded to 256 lanes
_H4_PAD = 128    # hidden width 100 padded to 128 lanes


def _mlp_kernel(x_ref, w1_ref, b1_ref, w2_ref, b2_ref, w3_ref, b3_ref,
                w4_ref, b4_ref, w5_ref, b5_ref, o_ref):
    # All matmuls: bf16 operands, f32 accumulation (MXU-native everywhere).
    # All elementwise work (bias, ReLU, final reduce) stays in f32.
    # Layer 1: [tb, 128] @ [128, 256]
    h = jnp.dot(x_ref[...], w1_ref[...], preferred_element_type=jnp.float32)
    h = jnp.maximum(h + b1_ref[...], 0.0)
    # Layer 2: [tb, 256] @ [256, 256]
    h = jnp.dot(h.astype(jnp.bfloat16), w2_ref[...],
                preferred_element_type=jnp.float32)
    h = jnp.maximum(h + b2_ref[...], 0.0)
    # Layer 3: [tb, 256] @ [256, 256]
    h = jnp.dot(h.astype(jnp.bfloat16), w3_ref[...],
                preferred_element_type=jnp.float32)
    h = jnp.maximum(h + b3_ref[...], 0.0)
    # Layer 4: [tb, 256] @ [256, 128]
    h = jnp.dot(h.astype(jnp.bfloat16), w4_ref[...],
                preferred_element_type=jnp.float32)
    h = jnp.maximum(h + b4_ref[...], 0.0)
    # Layer 5 (Linear(100, 1)): per-lane multiply + lane reduce on VPU/XLU
    # instead of a 1-wide MXU matmul; bias comes from SMEM as a scalar.
    y = jnp.sum(h * w5_ref[...], axis=-1, keepdims=True) + b5_ref[0, 0]
    o_ref[...] = y.astype(o_ref.dtype)


def _round_up(x, m):
    return (x + m - 1) // m * m


def _pad2(a, rows, cols):
    return jnp.pad(a, ((0, rows - a.shape[0]), (0, cols - a.shape[1])))


def student_o_forward(x, params, *, tile_b=2048):
    """x: [B, 100] f32. params: 5 tuples (w, b) with w in [in, out] layout."""
    (w1, b1), (w2, b2), (w3, b3), (w4, b4), (w5, b5) = params
    B, F = x.shape

    # ---- batch tiling: minimize padding, keep >= 2 (even) tiles for v7x ----
    n = pl.cdiv(B, tile_b)
    if n == 1 and B >= 16:
        n = 2                       # let both v7x TensorCores get a tile
    if n > 1 and n % 2:
        n += 1                      # even tile count -> even cross-core split
    tb = _round_up(pl.cdiv(B, n), 16)   # 16: clean bf16 sublane packing
    b_pad = n * tb

    # ---- input: pad to (b_pad, 128), stream as bf16 (half the DMA bytes) ----
    xp = jnp.pad(x, ((0, b_pad - B), (0, _IN_PAD - F))).astype(jnp.bfloat16)

    # ---- weights: zero-pad to lane-aligned shapes (exact); bf16 for the MXU ----
    w1p = _pad2(w1, _IN_PAD, _H_PAD).astype(jnp.bfloat16)
    b1p = _pad2(b1.reshape(1, -1), 1, _H_PAD)                 # f32
    w2p = _pad2(w2, _H_PAD, _H_PAD).astype(jnp.bfloat16)
    b2p = _pad2(b2.reshape(1, -1), 1, _H_PAD)
    w3p = _pad2(w3, _H_PAD, _H_PAD).astype(jnp.bfloat16)
    b3p = _pad2(b3.reshape(1, -1), 1, _H_PAD)
    w4p = _pad2(w4, _H_PAD, _H4_PAD).astype(jnp.bfloat16)
    b4p = _pad2(b4.reshape(1, -1), 1, _H4_PAD)
    w5p = _pad2(w5.reshape(1, -1), 1, _H4_PAD)                # f32, VPU reduce
    b5p = b5.reshape(1, 1)                                    # scalar -> SMEM

    grid = (n,)

    def resident(arr):
        # Full-array block with constant index map: fetched once, VMEM-resident.
        nd = arr.ndim
        return pl.BlockSpec(arr.shape, lambda i, _nd=nd: (0,) * _nd)

    flops = 2 * b_pad * (100 * 200 + 200 * 200 + 200 * 200 + 200 * 100 + 100)
    weight_bytes = sum(int(a.size) * a.dtype.itemsize for a in
                       (w1p, b1p, w2p, b2p, w3p, b3p, w4p, b4p, w5p, b5p))
    bytes_accessed = int(xp.size) * 2 + b_pad * 4 + weight_bytes

    out = pl.pallas_call(
        _mlp_kernel,
        out_shape=jax.ShapeDtypeStruct((b_pad, 1), jnp.float32),
        grid=grid,
        in_specs=[
            pl.BlockSpec((tb, _IN_PAD), lambda i: (i, 0)),    # streamed x tiles
            resident(w1p), resident(b1p),
            resident(w2p), resident(b2p),
            resident(w3p), resident(b3p),
            resident(w4p), resident(b4p),
            resident(w5p),
            pl.BlockSpec(memory_space=pltpu.MemorySpace.SMEM),  # b5 scalar
        ],
        out_specs=pl.BlockSpec((tb, 1), lambda i: (i, 0)),
        compiler_params=pltpu.CompilerParams(
            dimension_semantics=("parallel",),
            vmem_limit_bytes=32 * 1024 * 1024,
        ),
        cost_estimate=pl.CostEstimate(
            flops=flops, transcendentals=0, bytes_accessed=bytes_accessed),
    )(xp, w1p, b1p, w2p, b2p, w3p, b3p, w4p, b4p, w5p, b5p)

    return out[:B]


def init_params(key):
    """Xavier-normal weights (StudentO.init_weights), zero biases.

    PyTorch nn.Linear stores weight as [out, in]; we keep the [in, out]
    transpose so the kernel computes x @ W + b directly (same math).
    """
    dims = [(100, 200), (200, 200), (200, 200), (200, 100), (100, 1)]
    keys = jax.random.split(key, len(dims))
    params = []
    for k, (fi, fo) in zip(keys, dims):
        std = (2.0 / (fi + fo)) ** 0.5
        w = std * jax.random.normal(k, (fi, fo), dtype=jnp.float32)
        b = jnp.zeros((fo,), dtype=jnp.float32)
        params.append((w, b))
    return params


def reference_forward_f32(x, params):
    h = x
    for w, b in params[:-1]:
        h = jnp.maximum(h @ w + b, 0.0)
    w5, b5 = params[-1]
    return h @ w5 + b5


def reference_forward_bf16(x, params):
    """Pure-JAX reference with the same cast points as the kernel
    (bf16 matmul operands, f32 accumulation, f32 elementwise)."""
    (w1, b1), (w2, b2), (w3, b3), (w4, b4), (w5, b5) = params
    h = jnp.dot(x.astype(jnp.bfloat16), w1.astype(jnp.bfloat16),
                preferred_element_type=jnp.float32)
    h = jnp.maximum(h + b1, 0.0)
    for w, b in ((w2, b2), (w3, b3), (w4, b4)):
        h = jnp.dot(h.astype(jnp.bfloat16), w.astype(jnp.bfloat16),
                    preferred_element_type=jnp.float32)
        h = jnp.maximum(h + b, 0.0)
    return h @ w5 + b5


if __name__ == "__main__":
    key = jax.random.PRNGKey(0)
    k_x, k_p = jax.random.split(key)

    B = 64
    x = jax.random.normal(k_x, (B, 100), dtype=jnp.float32)
    params = init_params(k_p)

    out = student_o_forward(x, params)
    out = jax.block_until_ready(out)
    assert out.shape == (B, 1)

    # Tight check against a reference with identical bf16 cast points.
    ref_bf16 = reference_forward_bf16(x, params)
    assert jnp.allclose(out, ref_bf16, atol=1e-3, rtol=1e-3), \
        float(jnp.max(jnp.abs(out - ref_bf16)))

    # Sanity check against the full-f32 reference (bf16 operand rounding only).
    ref_f32 = reference_forward_f32(x, params)
    assert float(jnp.max(jnp.abs(out - ref_f32))) < 1e-1

    print("KERNEL_OK")
</pallas_src>

<mosaic_0001>
module attributes {stable_mosaic.version = 11 : i64} {
  func.func @_mlp_kernel(%arg0: i32, %arg1: memref<32x128xbf16, #tpu.memory_space<vmem>>, %arg2: memref<128x256xbf16, #tpu.memory_space<vmem>>, %arg3: memref<1x256xf32, #tpu.memory_space<vmem>>, %arg4: memref<256x256xbf16, #tpu.memory_space<vmem>>, %arg5: memref<1x256xf32, #tpu.memory_space<vmem>>, %arg6: memref<256x256xbf16, #tpu.memory_space<vmem>>, %arg7: memref<1x256xf32, #tpu.memory_space<vmem>>, %arg8: memref<256x128xbf16, #tpu.memory_space<vmem>>, %arg9: memref<1x128xf32, #tpu.memory_space<vmem>>, %arg10: memref<1x128xf32, #tpu.memory_space<vmem>>, %arg11: memref<1x1xf32, #tpu.memory_space<smem>>, %arg12: memref<32x1xf32, #tpu.memory_space<vmem>>) attributes {dimension_semantics = [#tpu.dimension_semantics<parallel>], iteration_bounds = array<i64: 2>, scalar_prefetch = 0 : i64, scratch_operands = 0 : i64, tpu.core_type = #tpu.core_type<tc>, window_params = [{transform_indices = @transform_0, window_bounds = array<i64: 32, 128>}, {pipeline_mode = #tpu.pipeline_mode<synchronous>, transform_indices = @transform_1, window_bounds = array<i64: 128, 256>}, {pipeline_mode = #tpu.pipeline_mode<synchronous>, transform_indices = @transform_2, window_bounds = array<i64: 1, 256>}, {pipeline_mode = #tpu.pipeline_mode<synchronous>, transform_indices = @transform_3, window_bounds = array<i64: 256, 256>}, {pipeline_mode = #tpu.pipeline_mode<synchronous>, transform_indices = @transform_4, window_bounds = array<i64: 1, 256>}, {pipeline_mode = #tpu.pipeline_mode<synchronous>, transform_indices = @transform_5, window_bounds = array<i64: 256, 256>}, {pipeline_mode = #tpu.pipeline_mode<synchronous>, transform_indices = @transform_6, window_bounds = array<i64: 1, 256>}, {pipeline_mode = #tpu.pipeline_mode<synchronous>, transform_indices = @transform_7, window_bounds = array<i64: 256, 128>}, {pipeline_mode = #tpu.pipeline_mode<synchronous>, transform_indices = @transform_8, window_bounds = array<i64: 1, 128>}, {pipeline_mode = #tpu.pipeline_mode<synchronous>, transform_indices = @transform_9, window_bounds = array<i64: 1, 128>}, {transform_indices = @transform_10, window_bounds = array<i64: 1, 1>}, {transform_indices = @transform_11, window_bounds = array<i64: 32, 1>}]} {
    %c0 = arith.constant 0 : index
    %c0_0 = arith.constant 0 : index
    %0 = vector.load %arg1[%c0, %c0_0] : memref<32x128xbf16, #tpu.memory_space<vmem>>, vector<32x128xbf16>
    %c0_1 = arith.constant 0 : index
    %c0_2 = arith.constant 0 : index
    %1 = vector.load %arg2[%c0_1, %c0_2] : memref<128x256xbf16, #tpu.memory_space<vmem>>, vector<128x256xbf16>
    %cst = arith.constant dense<0.000000e+00> : vector<32x256xf32>
    %2 = tpu.matmul %0, %1, %cst {dimension_numbers = #tpu.dot_dimension_numbers<[1], [0], [0], [1], [0, 0, 1, 1], [], []>} : vector<32x128xbf16>, vector<128x256xbf16>, vector<32x256xf32> -> vector<32x256xf32>
    %c0_3 = arith.constant 0 : index
    %c0_4 = arith.constant 0 : index
    %3 = vector.load %arg3[%c0_3, %c0_4] : memref<1x256xf32, #tpu.memory_space<vmem>>, vector<1x256xf32>
    %4 = vector.broadcast %3 : vector<1x256xf32> to vector<32x256xf32>
    %5 = arith.addf %2, %4 : vector<32x256xf32>
    %cst_5 = arith.constant 0.000000e+00 : f32
    %6 = vector.broadcast %cst_5 : f32 to vector<32x256xf32>
    %7 = arith.maximumf %5, %6 : vector<32x256xf32>
    %8 = arith.truncf %7 : vector<32x256xf32> to vector<32x256xbf16>
    %c0_6 = arith.constant 0 : index
    %c0_7 = arith.constant 0 : index
    %9 = vector.load %arg4[%c0_6, %c0_7] : memref<256x256xbf16, #tpu.memory_space<vmem>>, vector<256x256xbf16>
    %cst_8 = arith.constant dense<0.000000e+00> : vector<32x256xf32>
    %10 = tpu.matmul %8, %9, %cst_8 {dimension_numbers = #tpu.dot_dimension_numbers<[1], [0], [0], [1], [0, 0, 1, 1], [], []>} : vector<32x256xbf16>, vector<256x256xbf16>, vector<32x256xf32> -> vector<32x256xf32>
    %c0_9 = arith.constant 0 : index
    %c0_10 = arith.constant 0 : index
    %11 = vector.load %arg5[%c0_9, %c0_10] : memref<1x256xf32, #tpu.memory_space<vmem>>, vector<1x256xf32>
    %12 = vector.broadcast %11 : vector<1x256xf32> to vector<32x256xf32>
    %13 = arith.addf %10, %12 : vector<32x256xf32>
    %cst_11 = arith.constant 0.000000e+00 : f32
    %14 = vector.broadcast %cst_11 : f32 to vector<32x256xf32>
    %15 = arith.maximumf %13, %14 : vector<32x256xf32>
    %16 = arith.truncf %15 : vector<32x256xf32> to vector<32x256xbf16>
    %c0_12 = arith.constant 0 : index
    %c0_13 = arith.constant 0 : index
    %17 = vector.load %arg6[%c0_12, %c0_13] : memref<256x256xbf16, #tpu.memory_space<vmem>>, vector<256x256xbf16>
    %cst_14 = arith.constant dense<0.000000e+00> : vector<32x256xf32>
    %18 = tpu.matmul %16, %17, %cst_14 {dimension_numbers = #tpu.dot_dimension_numbers<[1], [0], [0], [1], [0, 0, 1, 1], [], []>} : vector<32x256xbf16>, vector<256x256xbf16>, vector<32x256xf32> -> vector<32x256xf32>
    %c0_15 = arith.constant 0 : index
    %c0_16 = arith.constant 0 : index
    %19 = vector.load %arg7[%c0_15, %c0_16] : memref<1x256xf32, #tpu.memory_space<vmem>>, vector<1x256xf32>
    %20 = vector.broadcast %19 : vector<1x256xf32> to vector<32x256xf32>
    %21 = arith.addf %18, %20 : vector<32x256xf32>
    %cst_17 = arith.constant 0.000000e+00 : f32
    %22 = vector.broadcast %cst_17 : f32 to vector<32x256xf32>
    %23 = arith.maximumf %21, %22 : vector<32x256xf32>
    %24 = arith.truncf %23 : vector<32x256xf32> to vector<32x256xbf16>
    %c0_18 = arith.constant 0 : index
    %c0_19 = arith.constant 0 : index
    %25 = vector.load %arg8[%c0_18, %c0_19] : memref<256x128xbf16, #tpu.memory_space<vmem>>, vector<256x128xbf16>
    %cst_20 = arith.constant dense<0.000000e+00> : vector<32x128xf32>
    %26 = tpu.matmul %24, %25, %cst_20 {dimension_numbers = #tpu.dot_dimension_numbers<[1], [0], [0], [1], [0, 0, 1, 1], [], []>} : vector<32x256xbf16>, vector<256x128xbf16>, vector<32x128xf32> -> vector<32x128xf32>
    %c0_21 = arith.constant 0 : index
    %c0_22 = arith.constant 0 : index
    %27 = vector.load %arg9[%c0_21, %c0_22] : memref<1x128xf32, #tpu.memory_space<vmem>>, vector<1x128xf32>
    %28 = vector.broadcast %27 : vector<1x128xf32> to vector<32x128xf32>
    %29 = arith.addf %26, %28 : vector<32x128xf32>
    %cst_23 = arith.constant 0.000000e+00 : f32
    %30 = vector.broadcast %cst_23 : f32 to vector<32x128xf32>
    %31 = arith.maximumf %29, %30 : vector<32x128xf32>
    %c0_24 = arith.constant 0 : index
    %c0_25 = arith.constant 0 : index
    %32 = vector.load %arg10[%c0_24, %c0_25] : memref<1x128xf32, #tpu.memory_space<vmem>>, vector<1x128xf32>
    %33 = vector.broadcast %32 : vector<1x128xf32> to vector<32x128xf32>
    %34 = arith.mulf %31, %33 : vector<32x128xf32>
    %cst_26 = arith.constant dense<0.000000e+00> : vector<32xf32>
    %35 = vector.multi_reduction <add>, %34, %cst_26 [1] : vector<32x128xf32> to vector<32xf32>
    %36 = vector.shape_cast %35 : vector<32xf32> to vector<32x1xf32>
    %c0_27 = arith.constant 0 : index
    %c0_28 = arith.constant 0 : index
    %37 = memref.load %arg11[%c0_27, %c0_28] : memref<1x1xf32, #tpu.memory_space<smem>>
    %38 = vector.broadcast %37 : f32 to vector<32x1xf32>
    %39 = arith.addf %36, %38 : vector<32x1xf32>
    %c0_29 = arith.constant 0 : index
    %c0_30 = arith.constant 0 : index
    %40 = vector.load %arg12[%c0_29, %c0_30] : memref<32x1xf32, #tpu.memory_space<vmem>>, vector<32x1xf32>
    tpu.vector_store %arg12[%c0_29, %c0_30], %39 {strides = array<i32>} : memref<32x1xf32, #tpu.memory_space<vmem>>, vector<32x1xf32>,
    return
  }
  func.func @transform_0(%arg0: i32) -> (i32, i32) {
    %c0_i32 = arith.constant 0 : i32
    %c0_i32_0 = arith.constant 0 : i32
    return %arg0, %c0_i32 : i32, i32
  }
  func.func @transform_1(%arg0: i32) -> (i32, i32) {
    %c0_i32 = arith.constant 0 : i32
    %c0_i32_0 = arith.constant 0 : i32
    %c0_i32_1 = arith.constant 0 : i32
    return %c0_i32, %c0_i32_0 : i32, i32
  }
  func.func @transform_2(%arg0: i32) -> (i32, i32) {
    %c0_i32 = arith.constant 0 : i32
    %c0_i32_0 = arith.constant 0 : i32
    %c0_i32_1 = arith.constant 0 : i32
    return %c0_i32, %c0_i32_0 : i32, i32
  }
  func.func @transform_3(%arg0: i32) -> (i32, i32) {
    %c0_i32 = arith.constant 0 : i32
    %c0_i32_0 = arith.constant 0 : i32
    %c0_i32_1 = arith.constant 0 : i32
    return %c0_i32, %c0_i32_0 : i32, i32
  }
  func.func @transform_4(%arg0: i32) -> (i32, i32) {
    %c0_i32 = arith.constant 0 : i32
    %c0_i32_0 = arith.constant 0 : i32
    %c0_i32_1 = arith.constant 0 : i32
    return %c0_i32, %c0_i32_0 : i32, i32
  }
  func.func @transform_5(%arg0: i32) -> (i32, i32) {
    %c0_i32 = arith.constant 0 : i32
    %c0_i32_0 = arith.constant 0 : i32
    %c0_i32_1 = arith.constant 0 : i32
    return %c0_i32, %c0_i32_0 : i32, i32
  }
  func.func @transform_6(%arg0: i32) -> (i32, i32) {
    %c0_i32 = arith.constant 0 : i32
    %c0_i32_0 = arith.constant 0 : i32
    %c0_i32_1 = arith.constant 0 : i32
    return %c0_i32, %c0_i32_0 : i32, i32
  }
  func.func @transform_7(%arg0: i32) -> (i32, i32) {
    %c0_i32 = arith.constant 0 : i32
    %c0_i32_0 = arith.constant 0 : i32
    %c0_i32_1 = arith.constant 0 : i32
    return %c0_i32, %c0_i32_0 : i32, i32
  }
  func.func @transform_8(%arg0: i32) -> (i32, i32) {
    %c0_i32 = arith.constant 0 : i32
    %c0_i32_0 = arith.constant 0 : i32
    %c0_i32_1 = arith.constant 0 : i32
    return %c0_i32, %c0_i32_0 : i32, i32
  }
  func.func @transform_9(%arg0: i32) -> (i32, i32) {
    %c0_i32 = arith.constant 0 : i32
    %c0_i32_0 = arith.constant 0 : i32
    %c0_i32_1 = arith.constant 0 : i32
    return %c0_i32, %c0_i32_0 : i32, i32
  }
  func.func @transform_10(%arg0: i32) -> (i32, i32) {
    %c0_i32 = arith.constant 0 : i32
    %c0_i32_0 = arith.constant 0 : i32
    %c0_i32_1 = arith.constant 0 : i32
    return %c0_i32, %c0_i32_0 : i32, i32
  }
  func.func @transform_11(%arg0: i32) -> (i32, i32) {
    %c0_i32 = arith.constant 0 : i32
    %c0_i32_0 = arith.constant 0 : i32
    return %arg0, %c0_i32 : i32, i32
  }
}

</mosaic_0001>

<bundles_post_ra>
// kernel: tpu_custom_call.1
= control target key start
LH: loop header
LB: loop body
LE: loop exit
PB: predicated region body
PF: predicated region fallthrough
CT: control target
= control target key end

     0   :  { %s2552_s0 = inlined_call_operand.hbm [shape: bf16[64,128], index: 0, kind: input, shape index: {}]   ;;  %s2553_s1 = inlined_call_operand.hbm [shape: bf16[128,256], index: 1, kind: input, shape index: {}]   ;;  %s2554_s2 = inlined_call_operand.vmem [shape: f32[1,256], index: 2, kind: input, shape index: {}]   ;;  %s2555_s3 = inlined_call_operand.hbm [shape: bf16[256,256], index: 3, kind: input, shape index: {}]   ;;  %s2556_s4 = inlined_call_operand.vmem [shape: f32[1,256], index: 4, kind: input, shape index: {}]   ;;  %s2557_s5 = inlined_call_operand.hbm [shape: bf16[256,256], index: 5, kind: input, shape index: {}]   ;;  %s2558_s6 = inlined_call_operand.vmem [shape: f32[1,256], index: 6, kind: input, shape index: {}]   ;;  %s2559_s7 = inlined_call_operand.hbm [shape: bf16[256,128], index: 7, kind: input, shape index: {}]   ;;  %s2560_s8 = inlined_call_operand.vmem [shape: f32[1,128], index: 8, kind: input, shape index: {}]   ;;  %s2561_s9 = inlined_call_operand.vmem [shape: f32[1,128], index: 9, kind: input, shape index: {}]   ;;  %s2562_s10 = inlined_call_operand.<no memory space> [shape: f32[1,1], index: 10, kind: input, shape index: {}]   ;;  %s2563_s11 = inlined_call_operand.vmem [shape: f32[64,1], index: 11, kind: output, shape index: {}]  }
   0x1   :  { %2567 = sst [smem:[#allocation14_spill]] %s2553_s1 }
   0x2   :  { %16 = sst [smem:[#allocation2]] %s2562_s10 }
   0x3   :  { %17 = vsyncpa [#allocation4], 0 }
   0x4   :  { %19 = vsyncpa [#allocation4 + $0x1], 0 }
   0x5   :  { %20 = vsyncpa [#allocation6], 0 }
   0x6   :  { %21 = vsyncpa [#allocation9], 0  ;;  %s2387_s19 = smov 0   ;;  %s2389_s20 = smov 0  }
   0x7   :  { %s2391_s21 = smov 0   ;;  %s2393_s22 = smov 0  }
   0x8 LB: > { %s2564_s10 = sadd.s32 4294967295, %s2314_s22   ;;  %p47_p0 = scmp.ne.s32.totalorder %s2306_s20, %s2302_s19  ;;  %s2314_s22 = sphi %s2393_s22, %s2580_s22   ;;  %s2310_s21 = sphi %s2391_s21, %s2579_s21   ;;  %s2306_s20 = sphi %s2389_s20, %s2578_s20   ;;  %s2302_s19 = sphi %s2387_s19, %s2577_s19  }
   0x9   : > { %p2409_p1 = scmp.eq.s32.totalorder %s2564_s10, 0  ;;  %p1526_p2 = scmp.ge.s32.totalorder %s2314_s22, 1 }
   0xa   : > { %p294_p3 = scmp.lt.s32.totalorder %s2314_s22, 3  ;;  %s2570_s1 = sld [smem:[#allocation14_spill]] }
   0xb   : > { %p2417_p4 = por %p2409_p1, %p47_p0  ;;  %s2316_s29 = smov [#allocation5]  }
   0xc   : > { %p2424_p5 = pnand %p1526_p2, %p294_p3  ;;  %s307_s30 = sshll.u32 %s2316_s29, 4  ;;  %s308_s30 = int_to_ptr.vmem [resolvable:$true] %s307_s30 }
   0xd   : > { %s339_s15 = sshll.u32 %s2557_s5, 4  ;;  %s2317_s16 = smov 128   ;;  %s340_s15 = int_to_ptr.hbm [resolvable:$true] %s339_s15 }
   0xe   : > { %p2054_p6 = pneg %p2424_p5  ;;  %s2318_s17 = smov 8  }
   0xf   : > { %s2319_s18 = smov [#allocation8]   ;;  %s322_s29 = sshll.u32 %s2555_s3, 4  ;;  %s323_s29 = int_to_ptr.hbm [resolvable:$true] %s322_s29 }
  0x10   : > { %s305_s27 = sshll.u32 %s2570_s1, 4  ;;  %p2432_p7 = pnand %p2054_p6, %p2409_p1  ;;  %s306_s27 = int_to_ptr.hbm [resolvable:$true] %s305_s27 }
  0x11   : > { %s341_s19 = sshll.u32 %s2319_s18, 4  ;;  %s356_s10 = sshll.u32 %s2559_s7, 4  ;;  %s342_s19 = int_to_ptr.vmem [resolvable:$true] %s341_s19  ;;  %s357_s10 = int_to_ptr.hbm [resolvable:$true] %s356_s10 }
  0x12   : > { %2057 = dma.hbm_to_vmem [thread:$0]  (!%p2432_p7), %s306_s27, 2048, %s308_s30, [#allocation6], %s2317_s16, %s2317_s16, %s2318_s17  }
  0x13   : > { %2063 = dma.hbm_to_vmem [thread:$0]  (!%p2432_p7), %s340_s15, 4096, %s342_s19, [#allocation9], %s2317_s16, %s2317_s16, %s2318_s17  }
  0x14   : > { %s2320_s27 = smov [#allocation7]   ;;  %s2321_s18 = smov [#allocation10]  }
  0x15   : > { %s324_s30 = sshll.u32 %s2320_s27, 4  ;;  %s358_s15 = sshll.u32 %s2321_s18, 4  ;;  %s325_s30 = int_to_ptr.vmem [resolvable:$true] %s324_s30  ;;  %s359_s15 = int_to_ptr.vmem [resolvable:$true] %s358_s15 }
  0x16   : > { %2060 = dma.hbm_to_vmem [thread:$0]  (!%p2432_p7), %s323_s29, 4096, %s325_s30, [#allocation6], %s2317_s16, %s2317_s16, %s2318_s17  }
  0x17   : > { %s2565_s19 = smov 64   ;;  %s2566_s25 = smov 4  }
  0x18   : > { %2066 = dma.hbm_to_vmem [thread:$0]  (!%p2432_p7), %s357_s10, 2048, %s359_s15, [#allocation9], %s2565_s19, %s2565_s19, %s2566_s25  }
  0x19   : > { %s2457_s26 = sadd.s32 1, %s2314_s22   ;;  %s34_s14 = sadd.s32 1, %s2310_s21 }
  0x1a   : > { %s31_s13 = ssub.s32 %s2314_s22, %s2457_s26  ;;  %p41_p9 = scmp.ne.s32.totalorder %s2310_s21, %s2306_s20 }
  0x1b   : > { %p32_p8 = scmp.eq.s32.totalorder %s31_s13, 0  ;;  %p42_p10 = scmp.eq.s32.totalorder %s2314_s22, 0 }
  0x1c   : > { %s381_s17 = sand.u32 1, %s2310_s21   ;;  %s1937_s29 = sshll.u32 %s2314_s22, 4 }
  0x1d   : > { %s2466_s16 = scalar_select %p32_p8, %s2310_s21, %s34_s14  }
  0x1e   : > { %p43_p11 = por %p42_p10, %p41_p9  ;;  %p2075_p12 = scmp.lt.s32.totalorder %s2314_s22, 2 }
  0x1f   : > { %s1532_s27 = sshll.u32 %s381_s17, 4  ;;  %s390_s18 = scalar_lea.hbm %s2552_s0, %s1937_s29 }
  0x20   : > { %s391_s10 = sshll.u32 %s390_s18, 4  ;;  %s385_s15 = scalar_lea.vmem [#allocation3], %s1532_s27  ;;  %s392_s10 = int_to_ptr.hbm [resolvable:$true] %s391_s10 }
  0x21   : > { %s393_s19 = sshll.u32 %s385_s15, 4  ;;  %p2474_p13 = pnand %p2075_p12, %p43_p11  ;;  %s394_s19 = int_to_ptr.vmem [resolvable:$true] %s393_s19 }
  0x22   : > { %s382_s14 = scalar_lea.sflag [#allocation4], %s381_s17  ;;  %s2242_s25 = sshra.s32 %s392_s10, 4  ;;  %s2243_s25 = int_to_ptr.hbm [resolvable:$true] %s2242_s25 }
  0x23   : > { %s2244_s1 = scalar_lea.hbm %s2243_s25, 16  ;;  %p2246_p2 = pneg %p2474_p13 }
  0x24   : > { %p2245_p0 = scmp.ne.s32.totalorder %s2243_s25, %s2244_s1  ;;  %s2249_s27 = scalar_lea.hbm %s2552_s0, 32 }
  0x25   : > { %p2250_p7 = scmp.lt.s32.totalorder %s2243_s25, %s2552_s0  ;;  %p2251_p8 = scmp.lt.s32.totalorder %s2249_s27, %s2244_s1 }
  0x26   : > { %p2247_p3 = pnand %p2246_p2, %p2245_p0 }
  0x27   : > { %p2252_p9 = por %p2251_p8, %p2250_p7 }
  0x28   : > { %p2248_p6 = pneg %p2247_p3 }
  0x2a   : > { %p2253_p10 = pnand %p2252_p9, %p2248_p6 }
  0x2c   : > { %2256 = shalt.err (!%p2253_p10)
}
  0x2d   : > { %s2574_s17 = smov 4   ;;  %s2575_s15 = smov 64  }
  0x2e   : > { %2070 = dma.hbm_to_vmem [thread:$0]  (!%p2474_p13), %s392_s10, 256, %s394_s19, %s382_s14, %s2575_s15, %s2575_s15, %s2574_s17  }
  0x2f   : > { %405 = sbr.rel (%p2424_p5) target bundleno = 810 (0x32a), region = 64  ;;  %s407_s29 = sand.u32 (!%p2424_p5), 1, %s2306_s20  }
  0x30   : > { %s2494_s12 = sshll.u32 (!%p2424_p5), %s407_s29, 4  ;;  %s408_s25 = scalar_lea.sflag (!%p2424_p5), [#allocation4], %s407_s29 }
  0x31   : > { %s411_s1 = scalar_lea.vmem (!%p2424_p5), [#allocation3], %s2494_s12 }
  0x34   : > { %2289 = dma.done.wait (%p2417_p4), %s408_s25, 256  }
  0x35   : > { %2291 = vsyncadd (%p2417_p4), %s408_s25, 4294967040 }
  0x36   : > { %2293 = dma.done.wait (%p2409_p1), [#allocation6], 6144  }
  0x37   : > { %2295 = vsyncadd (%p2409_p1), [#allocation6], 4294961152 }
  0x38   : > { %2297 = dma.done.wait (%p2409_p1), [#allocation9], 6144  }
  0x39   : > { %2299 = vsyncadd (%p2409_p1), [#allocation9], 4294961152  ;;  %v1609_v0 = vld [vmem:[#allocation5 + $0x70] sm:$0xf]  ;;  %v1955_v1 = vld [vmem:[#allocation5 + $0x74] sm:$0xf0] }
  0x3a   : > { %v1954_v2 = vld [vmem:[#allocation5 + $0x74] sm:$0xf]  ;;  %v1610_v3 = vor.u32 %v1955_v1, %v1609_v0  ;;  %v1611_v4 = vld [vmem:[#allocation5 + $0x78] sm:$0xf0]  ;;  %v1601_v5 = vld [vmem:[#allocation5 + $0x60] sm:$0xf] }
  0x3b   : > { %v1953_v6 = vld [vmem:[#allocation5 + $0x64] sm:$0xf0]  ;;  %v1614_v7 = vor.u32 %v1954_v2, %v1611_v4  ;;  %v1952_v8 = vld [vmem:[#allocation5 + $0x64] sm:$0xf]  ;;  %v1603_v9 = vld [vmem:[#allocation5 + $0x68] sm:$0xf0] }
  0x3c   : > { %596 = vmatpush.bf16.msra.mxu0 %v1610_v3  ;;  %v1602_v10 = vor.u32 %v1953_v6, %v1601_v5  ;;  %v1606_v11 = vor.u32 %v1952_v8, %v1603_v9  ;;  %v1593_v12 = vld [vmem:[#allocation5 + $0x50] sm:$0xf]  ;;  %v1951_v13 = vld [vmem:[#allocation5 + $0x54] sm:$0xf0]  ;;  %v1950_v14 = vld [vmem:[#allocation5 + $0x54] sm:$0xf] }
  0x3d   : > { %615 = vmatpush.bf16.msra.mxu1 %v1614_v7  ;;  %v1595_v15 = vld [vmem:[#allocation5 + $0x58] sm:$0xf0]  ;;  %v1594_v16 = vor.u32 %v1951_v13, %v1593_v12  ;;  %v1585_v18 = vld [vmem:[#allocation5 + $0x40] sm:$0xf]  ;;  %v1949_v19 = vld [vmem:[#allocation5 + $0x44] sm:$0xf0] }
  0x3e   : > { %v1598_v17 = vor.u32 %v1950_v14, %v1595_v15  ;;  %v1948_v20 = vld [vmem:[#allocation5 + $0x44] sm:$0xf]  ;;  %v1587_v21 = vld [vmem:[#allocation5 + $0x48] sm:$0xf0]  ;;  %v1586_v22 = vor.u32 %v1949_v19, %v1585_v18  ;;  %v1577_v24 = vld [vmem:[#allocation5 + $0x30] sm:$0xf] }
  0x3f   : > { %v1590_v23 = vor.u32 %v1948_v20, %v1587_v21  ;;  %v1947_v25 = vld [vmem:[#allocation5 + $0x34] sm:$0xf0]  ;;  %v1946_v26 = vld [vmem:[#allocation5 + $0x34] sm:$0xf]  ;;  %v1579_v27 = vld [vmem:[#allocation5 + $0x38] sm:$0xf0] }
  0x40   : > { %597 = vmatpush.bf16.msra.mxu0 %v1602_v10  ;;  %v1578_v28 = vor.u32 %v1947_v25, %v1577_v24  ;;  %v1582_v29 = vor.u32 %v1946_v26, %v1579_v27  ;;  %v1569_v30 = vld [vmem:[#allocation5 + $0x20] sm:$0xf]  ;;  %v1945_v31 = vld [vmem:[#allocation5 + $0x24] sm:$0xf0]  ;;  %v1944_v32 = vld [vmem:[#allocation5 + $0x24] sm:$0xf] }
  0x41   : > { %616 = vmatpush.bf16.msra.mxu1 %v1606_v11  ;;  %v1571_v33 = vld [vmem:[#allocation5 + $0x28] sm:$0xf0]  ;;  %v1570_v34 = vor.u32 %v1945_v31, %v1569_v30  ;;  %v1673_v35 = vld [vmem:[#allocation7 + $0x70] sm:$0xf]  ;;  %v1971_v36 = vld [vmem:[#allocation7 + $0x74] sm:$0xf0] }
  0x42   : > { %v1737_v37 = vld [vmem:[#allocation7 + $0xf0] sm:$0xf]  ;;  %v1574_v38 = vor.u32 %v1944_v32, %v1571_v33  ;;  %v1943_v40 = vld [vmem:[#allocation5 + $0x14] sm:$0xf0]  ;;  %v1674_v41 = vor.u32 %v1971_v36, %v1673_v35  ;;  %v1942_v43 = vld [vmem:[#allocation5 + $0x14] sm:$0xf] }
  0x43   : > { %v1561_v39 = vld [vmem:[#allocation5 + $0x10] sm:$0xf]  ;;  %v1987_v42 = vld [vmem:[#allocation7 + $0xf4] sm:$0xf0]  ;;  %v1563_v44 = vld [vmem:[#allocation5 + $0x18] sm:$0xf0] }
  0x44   : > { %598 = vmatpush.bf16.msra.mxu0 %v1594_v16  ;;  %v1738_v45 = vor.u32 %v1987_v42, %v1737_v37  ;;  %v1665_v46 = vld [vmem:[#allocation7 + $0x60] sm:$0xf]  ;;  %844 = vmatpush.bf16.msra.mxu2 %v1674_v41  ;;  %v1969_v48 = vld [vmem:[#allocation7 + $0x64] sm:$0xf0]  ;;  %v1562_v51 = vor.u32 %v1943_v40, %v1561_v39  ;;  %v1940_v53 = vld [vmem:[#allocation5 + $0x4] sm:$0xf]  ;;  %v1566_v57 = vor.u32 %v1942_v43, %v1563_v44 }
  0x45   : > { %617 = vmatpush.bf16.msra.mxu1 %v1598_v17  ;;  %v1553_v47 = vld [vmem:[#allocation5] sm:$0xf]  ;;  %v1985_v50 = vld [vmem:[#allocation7 + $0xe4] sm:$0xf0]  ;;  %v1555_v54 = vld [vmem:[#allocation5 + $0x8] sm:$0xf0]  ;;  %v1666_v55 = vor.u32 %v1969_v48, %v1665_v46 }
  0x46   : > { %v1729_v49 = vld [vmem:[#allocation7 + $0xe0] sm:$0xf]  ;;  %v1941_v52 = vld [vmem:[#allocation5 + $0x4] sm:$0xf0]  ;;  %863 = vmatpush.bf16.msra.mxu3 %v1738_v45  ;;  %v1970_v58 = vld [vmem:[#allocation7 + $0x74] sm:$0xf]  ;;  %v1558_v7 = vor.u32 %v1940_v53, %v1555_v54 }
  0x47   : > { %v1730_v56 = vor.u32 %v1985_v50, %v1729_v49  ;;  %v1657_v59 = vld [vmem:[#allocation7 + $0x50] sm:$0xf]  ;;  %v1967_v60 = vld [vmem:[#allocation7 + $0x54] sm:$0xf0]  ;;  %v1675_v61 = vld [vmem:[#allocation7 + $0x78] sm:$0xf0]  ;;  %v1554_v3 = vor.u32 %v1941_v52, %v1553_v47 }
  0x48   : > { %599 = vmatpush.bf16.msra.mxu0 %v1586_v22  ;;  %v1721_v62 = vld [vmem:[#allocation7 + $0xd0] sm:$0xf]  ;;  %v1983_v63 = vld [vmem:[#allocation7 + $0xd4] sm:$0xf0]  ;;  %v1986_v0 = vld [vmem:[#allocation7 + $0xf4] sm:$0xf]  ;;  %845 = vmatpush.bf16.msra.mxu2 %v1666_v55  ;;  %v1658_v2 = vor.u32 %v1967_v60, %v1657_v59  ;;  %v1678_v8 = vor.u32 %v1970_v58, %v1675_v61 }
  0x49   : > { %618 = vmatpush.bf16.msra.mxu1 %v1590_v23  ;;  %v1739_v1 = vld [vmem:[#allocation7 + $0xf8] sm:$0xf0]  ;;  %v1722_v4 = vor.u32 %v1983_v63, %v1721_v62  ;;  %v1649_v5 = vld [vmem:[#allocation7 + $0x40] sm:$0xf]  ;;  %v1965_v6 = vld [vmem:[#allocation7 + $0x44] sm:$0xf0] }
  0x4a   : > { %864 = vmatpush.bf16.msra.mxu3 %v1730_v56  ;;  %v1713_v9 = vld [vmem:[#allocation7 + $0xc0] sm:$0xf]  ;;  %v1981_v10 = vld [vmem:[#allocation7 + $0xc4] sm:$0xf0]  ;;  %v1742_v11 = vor.u32 %v1986_v0, %v1739_v1  ;;  %v1968_v12 = vld [vmem:[#allocation7 + $0x64] sm:$0xf]  ;;  %v1650_v17 = vor.u32 %v1965_v6, %v1649_v5 }
  0x4b   : > { %v1667_v13 = vld [vmem:[#allocation7 + $0x68] sm:$0xf0]  ;;  %v1938_v14 = vld [vmem:[%s411_s1] sm:$0xff]  ;;  %v1714_v18 = vor.u32 %v1981_v10, %v1713_v9  ;;  %v1659_v22 = vld [vmem:[#allocation7 + $0x58] sm:$0xf0]  ;;  %s2576_s17 = sadd.s32 4294967295, %s2314_s22  }
  0x4c   : > { %600 = vmatpush.bf16.msra.mxu0 %v1578_v28  ;;  %v1984_v15 = vld [vmem:[#allocation7 + $0xe4] sm:$0xf]  ;;  %v1731_v16 = vld [vmem:[#allocation7 + $0xe8] sm:$0xf0]  ;;  %846 = vmatpush.bf16.msra.mxu2 %v1658_v2  ;;  %v1670_v19 = vor.u32 %v1968_v12, %v1667_v13  ;;  %v1966_v21 = vld [vmem:[#allocation7 + $0x54] sm:$0xf] }
  0x4d   : > { %619 = vmatpush.bf16.msra.mxu1 %v1582_v29  ;;  %v1734_v20 = vor.u32 %v1984_v15, %v1731_v16  ;;  %v1982_v23 = vld [vmem:[#allocation7 + $0xd4] sm:$0xf]  ;;  %v1723_v24 = vld [vmem:[#allocation7 + $0xd8] sm:$0xf0]  ;;  %v1662_v25 = vor.u32 %v1966_v21, %v1659_v22  ;;  %v1964_v27 = vld [vmem:[#allocation7 + $0x44] sm:$0xf] }
  0x4e   : > { %865 = vmatpush.bf16.msra.mxu3 %v1722_v4  ;;  %v1726_v26 = vor.u32 %v1982_v23, %v1723_v24  ;;  %v1651_v28 = vld [vmem:[#allocation7 + $0x48] sm:$0xf0]  ;;  %v1980_v29 = vld [vmem:[#allocation7 + $0xc4] sm:$0xf]  ;;  %v1963_v35 = vld [vmem:[#allocation7 + $0x34] sm:$0xf0] }
  0x4f   : > { %v1715_v30 = vld [vmem:[#allocation7 + $0xc8] sm:$0xf0]  ;;  %v1654_v31 = vor.u32 %v1964_v27, %v1651_v28  ;;  %v1705_v36 = vld [vmem:[#allocation7 + $0xb0] sm:$0xf]  ;;  %v1962_v39 = vld [vmem:[#allocation7 + $0x34] sm:$0xf] }
  0x50   : > { %601 = vmatpush.bf16.msra.mxu0 %v1570_v34  ;;  %847 = vmatpush.bf16.msra.mxu2 %v1650_v17  ;;  %v1718_v32 = vor.u32 %v1980_v29, %v1715_v30  ;;  %v1939_v33 = vld [vmem:[%s411_s1 + $0x8] sm:$0xff]  ;;  %v1641_v34 = vld [vmem:[#allocation7 + $0x30] sm:$0xf]  ;;  %v1978_v43 = vld [vmem:[#allocation7 + $0xb4] sm:$0xf]  ;;  %s1541_s15 = sshll.u32 %s2576_s17, 2 }
  0x51   : > { %620 = vmatpush.bf16.msra.mxu1 %v1574_v38  ;;  %v1642_v37 = vor.u32 %v1963_v35, %v1641_v34  ;;  %v1979_v38 = vld [vmem:[#allocation7 + $0xb4] sm:$0xf0]  ;;  %v1643_v40 = vld [vmem:[#allocation7 + $0x38] sm:$0xf0]  ;;  %v1633_v46 = vld [vmem:[#allocation7 + $0x20] sm:$0xf] }
  0x52   : > { %866 = vmatpush.bf16.msra.mxu3 %v1714_v18  ;;  %v1706_v41 = vor.u32 %v1979_v38, %v1705_v36  ;;  %v1646_v42 = vor.u32 %v1962_v39, %v1643_v40  ;;  %v1707_v44 = vld [vmem:[#allocation7 + $0xb8] sm:$0xf0]  ;;  %v1961_v47 = vld [vmem:[#allocation7 + $0x24] sm:$0xf0]  ;;  %v1697_v49 = vld [vmem:[#allocation7 + $0xa0] sm:$0xf] }
  0x53   : > { %v1710_v45 = vor.u32 %v1978_v43, %v1707_v44  ;;  %v1634_v48 = vor.u32 %v1961_v47, %v1633_v46  ;;  %v1977_v50 = vld [vmem:[#allocation7 + $0xa4] sm:$0xf0]  ;;  %v1635_v53 = vld [vmem:[#allocation7 + $0x28] sm:$0xf0]  ;;  %v1976_v54 = vld [vmem:[#allocation7 + $0xa4] sm:$0xf] }
  0x54   : > { %602 = vmatpush.bf16.msra.mxu0 %v1562_v51  ;;  %848 = vmatpush.bf16.msra.mxu2 %v1642_v37  ;;  %v1960_v51 = vld [vmem:[#allocation7 + $0x24] sm:$0xf]  ;;  %v1698_v52 = vor.u32 %v1977_v50, %v1697_v49  ;;  %v1699_v55 = vld [vmem:[#allocation7 + $0xa8] sm:$0xf0]  ;;  %v1625_v58 = vld [vmem:[#allocation7 + $0x10] sm:$0xf] }
  0x55   : > { %621 = vmatpush.bf16.msra.mxu1 %v1566_v57  ;;  %v1638_v56 = vor.u32 %v1960_v51, %v1635_v53  ;;  %v1702_v57 = vor.u32 %v1976_v54, %v1699_v55  ;;  %v1959_v59 = vld [vmem:[#allocation7 + $0x14] sm:$0xf0]  ;;  %v1689_v60 = vld [vmem:[#allocation7 + $0x90] sm:$0xf]  ;;  %v1958_v63 = vld [vmem:[#allocation7 + $0x14] sm:$0xf] }
  0x56   : > { %867 = vmatpush.bf16.msra.mxu3 %v1706_v41  ;;  %v1626_v61 = vor.u32 %v1959_v59, %v1625_v58  ;;  %v1975_v62 = vld [vmem:[#allocation7 + $0x94] sm:$0xf0]  ;;  %v1627_v0 = vld [vmem:[#allocation7 + $0x18] sm:$0xf0]  ;;  %v1617_v6 = vld [vmem:[#allocation7] sm:$0xf] }
  0x57   : > { %v1690_v1 = vor.u32 %v1975_v62, %v1689_v60  ;;  %v1630_v2 = vor.u32 %v1958_v63, %v1627_v0  ;;  %v1691_v4 = vld [vmem:[#allocation7 + $0x98] sm:$0xf0]  ;;  %v1973_v10 = vld [vmem:[#allocation7 + $0x84] sm:$0xf0]  ;;  %v1619_v12 = vld [vmem:[#allocation7 + $0x8] sm:$0xf0] }
  0x58   : > { %603 = vmatpush.bf16.msra.mxu0 %v1554_v3  ;;  %849 = vmatpush.bf16.msra.mxu2 %v1634_v48  ;;  %v1974_v3 = vld [vmem:[#allocation7 + $0x94] sm:$0xf]  ;;  %v1972_v15 = vld [vmem:[#allocation7 + $0x84] sm:$0xf]  ;;  %v1683_v16 = vld [vmem:[#allocation7 + $0x88] sm:$0xf0] }
  0x59   : > { %622 = vmatpush.bf16.msra.mxu1 %v1558_v7  ;;  %v1694_v5 = vor.u32 %v1974_v3, %v1691_v4  ;;  %v1957_v7 = vld [vmem:[#allocation7 + $0x4] sm:$0xf0]  ;;  %v1686_v17 = vor.u32 %v1972_v15, %v1683_v16  ;;  %v498_v18 = vld [vmem:[%s2554_s2] sm:$0x3]  ;;  %v2019_v21 = vld [vmem:[#allocation8 + $0xf4] sm:$0xf0] }
  0x5a   : > { %868 = vmatpush.bf16.msra.mxu3 %v1698_v52  ;;  %v1618_v9 = vor.u32 %v1957_v7, %v1617_v6  ;;  %v2018_v22 = vld [vmem:[#allocation8 + $0xf4] sm:$0xf]  ;;  %v2017_v27 = vld [vmem:[#allocation8 + $0xe4] sm:$0xf0]  ;;  %v2016_v29 = vld [vmem:[#allocation8 + $0xe4] sm:$0xf] }
  0x5b   : > { %604 = vmatmul.bf16.vlgmr.msra.gmra.mxu0 %v1938_v14  ;;  %v1859_v30 = vld [vmem:[#allocation8 + $0xe8] sm:$0xf0]  ;;  %v2003_v34 = vld [vmem:[#allocation8 + $0x74] sm:$0xf0]  ;;  %v2002_v35 = vld [vmem:[#allocation8 + $0x74] sm:$0xf] }
  0x5c   : > { %882 = vmatpush.bf16.msrb.mxu0 %v1678_v8  ;;  %623 = vmatmul.bf16.vlgmr.msra.gmra.mxu1 %v1938_v14  ;;  %v1681_v8 = vld [vmem:[#allocation7 + $0x80] sm:$0xf]  ;;  %v501_v36 = vperm.slane %v498_v18, 1  ;;  %v1862_v37 = vor.u32 %v2016_v29, %v1859_v30  ;;  %v1803_v39 = vld [vmem:[#allocation8 + $0x78] sm:$0xf0]  ;;  %p473_p1 = scmp.lt.s32.totalorder %s1541_s15, 7 }
  0x5d   : > { %901 = vmatpush.bf16.msrb.mxu1 %v1742_v11  ;;  %850 = vmatpush.bf16.msra.mxu2 %v1626_v61  ;;  %v1956_v11 = vld [vmem:[#allocation7 + $0x4] sm:$0xf]  ;;  %v1682_v13 = vor.u32 %v1973_v10, %v1681_v8  ;;  %v1849_v40 = vld [vmem:[#allocation8 + $0xd0] sm:$0xf]  ;;  %v1806_v41 = vor.u32 %v2002_v35, %v1803_v39  ;;  %v2014_v43 = vld [vmem:[#allocation8 + $0xd4] sm:$0xf] }
  0x5e   : > { %869 = vmatpush.bf16.msra.mxu3 %v1690_v1  ;;  %v1622_v14 = vor.u32 %v1956_v11, %v1619_v12  ;;  %v1851_v44 = vld [vmem:[#allocation8 + $0xd8] sm:$0xf0]  ;;  %v2001_v46 = vld [vmem:[#allocation8 + $0x64] sm:$0xf0]  ;;  %v2000_v47 = vld [vmem:[#allocation8 + $0x64] sm:$0xf] }
  0x5f   : > { %v1795_v51 = vld [vmem:[#allocation8 + $0x68] sm:$0xf0]  ;;  %v1854_v54 = vor.u32 %v2014_v43, %v1851_v44  ;;  %v1841_v59 = vld [vmem:[#allocation8 + $0xc0] sm:$0xf]  ;;  %v1999_v60 = vld [vmem:[#allocation8 + $0x54] sm:$0xf0] }
  0x60   : > { %883 = vmatpush.bf16.msrb.mxu0 %v1670_v19  ;;  %v1798_v55 = vor.u32 %v2000_v47, %v1795_v51  ;;  %v2013_v62 = vld [vmem:[#allocation8 + $0xc4] sm:$0xf0]  ;;  %v2012_v63 = vld [vmem:[#allocation8 + $0xc4] sm:$0xf]  ;;  %v1843_v0 = vld [vmem:[#allocation8 + $0xc8] sm:$0xf0] }
  0x61   : > { %902 = vmatpush.bf16.msrb.mxu1 %v1734_v20  ;;  %851 = vmatpush.bf16.msra.mxu2 %v1618_v9  ;;  %v1865_v20 = vld [vmem:[#allocation8 + $0xf0] sm:$0xf]  ;;  %v1842_v7 = vor.u32 %v2013_v62, %v1841_v59  ;;  %v1846_v8 = vor.u32 %v2012_v63, %v1843_v0  ;;  %v2010_v29 = vld [vmem:[#allocation8 + $0xb4] sm:$0xf]  ;;  %v1996_v35 = vld [vmem:[#allocation8 + $0x44] sm:$0xf] }
  0x62   : > { %870 = vmatpush.bf16.msra.mxu3 %v1682_v13  ;;  %v1866_v24 = vor.u32 %v2019_v21, %v1865_v20  ;;  %v1825_v39 = vld [vmem:[#allocation8 + $0xa0] sm:$0xf]  ;;  %v1827_v43 = vld [vmem:[#allocation8 + $0xa8] sm:$0xf0]  ;;  %v1994_v47 = vld [vmem:[#allocation8 + $0x34] sm:$0xf] }
  0x63   : > { %v1817_v51 = vld [vmem:[#allocation8 + $0x90] sm:$0xf]  ;;  %v1992_v59 = vld [vmem:[#allocation8 + $0x24] sm:$0xf]  ;;  %v1809_v63 = vld [vmem:[#allocation8 + $0x80] sm:$0xf] }
  0x64   : > { %884 = vmatpush.bf16.msrb.mxu0 %v1662_v25  ;;  %v1867_v25 = vld [vmem:[#allocation8 + $0xf8] sm:$0xf0]  ;;  %v2005_v0 = vld [vmem:[#allocation8 + $0x84] sm:$0xf0]  ;;  %s1408_s29 = sld [smem:[#allocation2]]  ;;  %s2582_s15 = smov (!%p473_p1, %s1541_s15), 7 }
  0x65   : > { %903 = vmatpush.bf16.msrb.mxu1 %v1726_v26  ;;  %v1857_v26 = vld [vmem:[#allocation8 + $0xe0] sm:$0xf]  ;;  %v1870_v28 = vor.u32 %v2018_v22, %v1867_v25  ;;  %v1787_v25 = vld [vmem:[#allocation8 + $0x58] sm:$0xf0]  ;;  %s1542_s12 = sshll.u32 %s2582_s15, 3  ;;  %vm1414_vm0 = vcmask 7168  }
  0x66   : > { %1149 = vmatpush.bf16.msrb.mxu3 %v1866_v24  ;;  %v1998_v24 = vld [vmem:[#allocation8 + $0x54] sm:$0xf]  ;;  %s476_s23 = scalar_lea.vmem %s2563_s11, %s1542_s12 }
  0x68   : > { %885 = vmatpush.bf16.msrb.mxu0 %v1654_v31  ;;  %v1801_v31 = vld [vmem:[#allocation8 + $0x70] sm:$0xf] }
  0x69   : > { %904 = vmatpush.bf16.msrb.mxu1 %v1718_v32  ;;  %v2516_v32 = vperm.slane %v498_v18, 0  ;;  %v1802_v38 = vor.u32 %v2003_v34, %v1801_v31  ;;  %v1835_v31 = vld [vmem:[#allocation8 + $0xb8] sm:$0xf0]  ;;  %v1997_v34 = vld [vmem:[#allocation8 + $0x44] sm:$0xf0] }
  0x6b   : > { %609 = vmatmul.bf16.gmra.mxu0 %v1939_v33  ;;  %1130 = vmatpush.bf16.msrb.mxu2 %v1802_v38 }
  0x6c   : > { %628 = vmatmul.bf16.gmra.mxu1 %v1939_v33  ;;  %886 = vmatpush.bf16.msrb.mxu0 %v1646_v42  ;;  %v1858_v33 = vor.u32 %v2017_v27, %v1857_v26  ;;  %v2015_v42 = vld [vmem:[#allocation8 + $0xd4] sm:$0xf0]  ;;  %v1790_v26 = vor.u32 %v1998_v24, %v1787_v25  ;;  %v1833_v27 = vld [vmem:[#allocation8 + $0xb0] sm:$0xf] }
  0x6d   : > { %905 = vmatpush.bf16.msrb.mxu1 %v1710_v45  ;;  %v1793_v45 = vld [vmem:[#allocation8 + $0x60] sm:$0xf]  ;;  %v1850_v49 = vor.u32 %v2015_v42, %v1849_v40  ;;  %v2009_v40 = vld [vmem:[#allocation8 + $0xa4] sm:$0xf0]  ;;  %v2035_v25 = vld [vmem:[#allocation10 + $0x78] sm:$0xff] }
  0x6e   : > { %1150 = vmatpush.bf16.msrb.mxu3 %v1858_v33  ;;  %v1794_v50 = vor.u32 %v2001_v46, %v1793_v45  ;;  %v1777_v33 = vld [vmem:[#allocation8 + $0x40] sm:$0xf]  ;;  %v1826_v42 = vor.u32 %v2009_v40, %v1825_v39  ;;  %v1769_v45 = vld [vmem:[#allocation8 + $0x30] sm:$0xf]  ;;  %v1995_v46 = vld [vmem:[#allocation8 + $0x34] sm:$0xf0] }
  0x70   : > { %887 = vmatpush.bf16.msrb.mxu0 %v1638_v56  ;;  %v1785_v56 = vld [vmem:[#allocation8 + $0x50] sm:$0xf]  ;;  %1131 = vmatpush.bf16.msrb.mxu2 %v1794_v50 }
  0x71   : > { %906 = vmatpush.bf16.msrb.mxu1 %v1702_v57  ;;  %v1786_v1 = vor.u32 %v1999_v60, %v1785_v56 }
  0x72   : > { %1151 = vmatpush.bf16.msrb.mxu3 %v1850_v49  ;;  %v1771_v49 = vld [vmem:[#allocation8 + $0x38] sm:$0xf0] }
  0x73   : > { %v1774_v50 = vor.u32 %v1994_v47, %v1771_v49 }
  0x74   : > { %888 = vmatpush.bf16.msrb.mxu0 %v1630_v2  ;;  %1132 = vmatpush.bf16.msrb.mxu2 %v1786_v1  ;;  %v2004_v1 = vld [vmem:[#allocation8 + $0x84] sm:$0xf] }
  0x75   : > { %907 = vmatpush.bf16.msrb.mxu1 %v1694_v5 }
  0x76   : > { %1152 = vmatpush.bf16.msrb.mxu3 %v1842_v7  ;;  %v1990_v7 = vld [vmem:[#allocation8 + $0x14] sm:$0xf] }
  0x78   : > { %889 = vmatpush.bf16.msrb.mxu0 %v1622_v14 }
  0x79   : > { %908 = vmatpush.bf16.msrb.mxu1 %v1686_v17 }
  0x7c   : > { %1168 = vmatpush.bf16.msra.mxu0 %v1806_v41  ;;  %v2008_v41 = vld [vmem:[#allocation8 + $0xa4] sm:$0xf] }
  0x7d   : > { %1187 = vmatpush.bf16.msra.mxu1 %v1870_v28  ;;  %v2011_v28 = vld [vmem:[#allocation8 + $0xb4] sm:$0xf0]  ;;  %v1830_v44 = vor.u32 %v2008_v41, %v1827_v43 }
  0x7e   : > { %v1834_v30 = vor.u32 %v2011_v28, %v1833_v27 }
  0x80   : > { %1169 = vmatpush.bf16.msra.mxu0 %v1798_v55  ;;  %1153 = vmatpush.bf16.msrb.mxu3 %v1834_v30  ;;  %v1819_v55 = vld [vmem:[#allocation8 + $0x98] sm:$0xf0] }
  0x81   : > { %1188 = vmatpush.bf16.msra.mxu1 %v1862_v37  ;;  %v1779_v37 = vld [vmem:[#allocation8 + $0x48] sm:$0xf0] }
  0x82   : > { %v1782_v38 = vor.u32 %v1996_v35, %v1779_v37 }
  0x84   : > { %1170 = vmatpush.bf16.msra.mxu0 %v1790_v26  ;;  %1154 = vmatpush.bf16.msrb.mxu3 %v1826_v42  ;;  %v2027_v26 = vld [vmem:[#allocation10 + $0x38] sm:$0xff] }
  0x85   : > { %1189 = vmatpush.bf16.msra.mxu1 %v1854_v54 }
  0x88   : > { %1171 = vmatpush.bf16.msra.mxu0 %v1782_v38 }
  0x89   : > { %1190 = vmatpush.bf16.msra.mxu1 %v1846_v8 }
  0x8c   : > { %1172 = vmatpush.bf16.msra.mxu0 %v1774_v50 }
  0xd8   : > { %v605_v19 = vpop.f32.mrf.mxu0 }
  0xd9   : > { %v624_v23 = vpop.f32.mrf.mxu1  ;;  %v606_v48 = vadd.f32 %v605_v19, %v2516_v32 }
  0xda   : > { %v625_v52 = vadd.f32 %v624_v23, %v501_v36 }
  0xdb   : > { %v634_v2 = vmax.f32 %v606_v48, 0.0  ;;  %v1770_v48 = vor.u32 %v1995_v46, %v1769_v45 }
  0xdc   : > { %v635_v4 = vmax.f32 %v625_v52, 0.0  ;;  %v2007_v52 = vld [vmem:[#allocation8 + $0x94] sm:$0xf0] }
  0xdd   : > { %v1818_v54 = vor.u32 %v2007_v52, %v1817_v51 }
  0xdf   : > { %1155 = vmatpush.bf16.msrb.mxu3 %v1818_v54 }
  0xe0   : > { %v607_v53 = vpop.f32.mrf.mxu0 }
  0xe1   : > { %v608_v57 = vadd.f32 %v607_v53, %v2516_v32  ;;  %v626_v58 = vpop.f32.mrf.mxu1  ;;  %v2006_v53 = vld [vmem:[#allocation8 + $0x94] sm:$0xf] }
  0xe2   : > { %v627_v61 = vadd.f32 %v626_v58, %v501_v36  ;;  %v1822_v56 = vor.u32 %v2006_v53, %v1819_v55  ;;  %v1993_v58 = vld [vmem:[#allocation8 + $0x24] sm:$0xf0] }
  0xe3   : > { %v636_v3 = vmax.f32 %v608_v57, 0.0  ;;  %v1761_v57 = vld [vmem:[#allocation8 + $0x20] sm:$0xf] }
  0xe4   : > { %v637_v5 = vmax.f32 %v627_v61, 0.0  ;;  %v1762_v60 = vor.u32 %v1993_v58, %v1761_v57  ;;  %v1763_v61 = vld [vmem:[#allocation8 + $0x28] sm:$0xf0] }
  0xe5   : > { %v642_v6 = vpack.c.bf16 %v636_v3, %v634_v2  ;;  %v1766_v62 = vor.u32 %v1992_v59, %v1763_v61  ;;  %v1810_v2 = vor.u32 %v2005_v0, %v1809_v63  ;;  %v1811_v3 = vld [vmem:[#allocation8 + $0x88] sm:$0xf0] }
  0xe6   : > { %v643_v9 = vpack.c.bf16 %v637_v5, %v635_v4  ;;  %v1814_v4 = vor.u32 %v2004_v1, %v1811_v3  ;;  %v1753_v5 = vld [vmem:[#allocation8 + $0x10] sm:$0xf]  ;;  %v2033_v3 = vld [vmem:[#allocation10 + $0x68] sm:$0xff] }
  0xe7   : > { %852 = vmatmul.bf16.vlgmr.msra.gmra.mxu2 %v642_v6  ;;  %890 = vmatmul.bf16.vlgmr.msrb.gmra.mxu0 %v642_v6  ;;  %v1991_v6 = vld [vmem:[#allocation8 + $0x14] sm:$0xf0] }
  0xe8   : > { %871 = vmatmul.bf16.vlgmr.msra.gmra.mxu3 %v643_v9  ;;  %909 = vmatmul.bf16.vlgmr.msrb.gmra.mxu1 %v643_v9  ;;  %v610_v10 = vpop.f32.mrf.mxu0  ;;  %v1754_v8 = vor.u32 %v1991_v6, %v1753_v5  ;;  %v1755_v9 = vld [vmem:[#allocation8 + $0x18] sm:$0xf0]  ;;  %v2032_v5 = vld [vmem:[#allocation10 + $0x60] sm:$0xff]  ;;  %v2025_v6 = vld [vmem:[#allocation10 + $0x28] sm:$0xff] }
  0xe9   : > { %v629_v11 = vpop.f32.mrf.mxu1  ;;  %v611_v12 = vadd.f32 %v610_v10, %v2516_v32  ;;  %1173 = vmatpush.bf16.msra.mxu0 %v1766_v62  ;;  %1156 = vmatpush.bf16.msrb.mxu3 %v1810_v2  ;;  %v1758_v10 = vor.u32 %v1990_v7, %v1755_v9  ;;  %v2031_v7 = vld [vmem:[#allocation10 + $0x58] sm:$0xff]  ;;  %v2030_v9 = vld [vmem:[#allocation10 + $0x50] sm:$0xff] }
  0xea   : > { %v630_v13 = vadd.f32 %v629_v11, %v501_v36  ;;  %v1745_v11 = vld [vmem:[#allocation8] sm:$0xf] }
  0xeb   : > { %v638_v18 = vmax.f32 %v611_v12, 0.0  ;;  %v1989_v12 = vld [vmem:[#allocation8 + $0x4] sm:$0xf0] }
  0xec   : > { %v639_v20 = vmax.f32 %v630_v13, 0.0  ;;  %v1988_v13 = vld [vmem:[#allocation8 + $0x4] sm:$0xf] }
  0xed   : > { %1174 = vmatpush.bf16.msra.mxu0 %v1758_v10  ;;  %1369 = vmatpush.bf16.msra.mxu3 %v2035_v25  ;;  %v2023_v10 = vld [vmem:[#allocation10 + $0x18] sm:$0xff] }
  0xf0   : > { %v612_v14 = vpop.f32.mrf.mxu0 }
  0xf1   : > { %v613_v15 = vadd.f32 %v612_v14, %v2516_v32  ;;  %v631_v16 = vpop.f32.mrf.mxu1  ;;  %v1838_v32 = vor.u32 %v2010_v29, %v1835_v31  ;;  %v1746_v14 = vor.u32 %v1989_v12, %v1745_v11  ;;  %v2034_v31 = vld [vmem:[#allocation10 + $0x70] sm:$0xff]  ;;  %v2029_v11 = vld [vmem:[#allocation10 + $0x48] sm:$0xff] }
  0xf2   : > { %v632_v17 = vadd.f32 %v631_v16, %v501_v36  ;;  %v1778_v36 = vor.u32 %v1997_v34, %v1777_v33  ;;  %1370 = vmatpush.bf16.msra.mxu3 %v2034_v31  ;;  %v2022_v12 = vld [vmem:[#allocation10 + $0x10] sm:$0xff] }
  0xf3   : > { %v640_v19 = vmax.f32 %v613_v15, 0.0  ;;  %1191 = vmatpush.bf16.msra.mxu1 %v1838_v32  ;;  %v1747_v15 = vld [vmem:[#allocation8 + $0x8] sm:$0xf0] }
  0xf4   : > { %v641_v21 = vmax.f32 %v632_v17, 0.0  ;;  %1133 = vmatpush.bf16.msrb.mxu2 %v1778_v36  ;;  %v1750_v16 = vor.u32 %v1988_v13, %v1747_v15  ;;  %v678_v17 = vld [vmem:[%s2556_s4] sm:$0x3] }
  0xf5   : > { %v644_v22 = vpack.c.bf16 %v640_v19, %v638_v18  ;;  %v681_v19 = vperm.slane %v678_v17, 1  ;;  %v2028_v13 = vld [vmem:[#allocation10 + $0x40] sm:$0xff] }
  0xf6   : > { %v645_v23 = vpack.c.bf16 %v641_v21, %v639_v20  ;;  %1175 = vmatpush.bf16.msra.mxu0 %v1750_v16  ;;  %1371 = vmatpush.bf16.msra.mxu3 %v2033_v3  ;;  %v2020_v15 = vld [vmem:[#allocation10] sm:$0xff] }
  0xf7   : > { %857 = vmatmul.bf16.gmra.mxu2 %v644_v22  ;;  %895 = vmatmul.bf16.gmra.mxu0 %v644_v22 }
  0xf8   : > { %876 = vmatmul.bf16.gmra.mxu3 %v645_v23  ;;  %914 = vmatmul.bf16.gmra.mxu1 %v645_v23  ;;  %v680_v23 = vperm.slane %v678_v17, 0  ;;  %v964_v17 = vld [vmem:[%s2558_s6] sm:$0x3] }
  0xf9   : > { %1192 = vmatpush.bf16.msra.mxu1 %v1830_v44  ;;  %1134 = vmatpush.bf16.msrb.mxu2 %v1770_v48 }
  0xfa   : > { %1372 = vmatpush.bf16.msra.mxu3 %v2032_v5 }
  0xfd   : > { %1193 = vmatpush.bf16.msra.mxu1 %v1822_v56  ;;  %1135 = vmatpush.bf16.msrb.mxu2 %v1762_v60 }
  0xfe   : > { %1373 = vmatpush.bf16.msra.mxu3 %v2031_v7 }
 0x101   : > { %1194 = vmatpush.bf16.msra.mxu1 %v1814_v4  ;;  %1136 = vmatpush.bf16.msrb.mxu2 %v1754_v8  ;;  %v2026_v4 = vld [vmem:[#allocation10 + $0x30] sm:$0xff]  ;;  %v2024_v8 = vld [vmem:[#allocation10 + $0x20] sm:$0xff] }
 0x102   : > { %1374 = vmatpush.bf16.msra.mxu3 %v2030_v9 }
 0x105   : > { %1137 = vmatpush.bf16.msrb.mxu2 %v1746_v14  ;;  %v2021_v14 = vld [vmem:[#allocation10 + $0x8] sm:$0xff] }
 0x106   : > { %1375 = vmatpush.bf16.msra.mxu3 %v2029_v11 }
 0x109   : > { %1350 = vmatpush.bf16.msra.mxu2 %v2027_v26 }
 0x10a   : > { %1376 = vmatpush.bf16.msra.mxu3 %v2028_v13 }
 0x10d   : > { %1351 = vmatpush.bf16.msra.mxu2 %v2026_v4  ;;  %v2121_v4 = vld [vmem:[%s2561_s9] ss:$0 sm:$0xff] }
 0x111   : > { %1352 = vmatpush.bf16.msra.mxu2 %v2025_v6 }
 0x115   : > { %1353 = vmatpush.bf16.msra.mxu2 %v2024_v8 }
 0x119   : > { %1354 = vmatpush.bf16.msra.mxu2 %v2023_v10 }
 0x11d   : > { %1355 = vmatpush.bf16.msra.mxu2 %v2022_v12 }
 0x121   : > { %1356 = vmatpush.bf16.msra.mxu2 %v2021_v14 }
 0x125   : > { %1357 = vmatpush.bf16.msra.mxu2 %v2020_v15 }
 0x164   : > { %v891_v18 = vpop.f32.mrf.mxu0 }
 0x165   : > { %v910_v20 = vpop.f32.mrf.mxu1  ;;  %v892_v21 = vadd.f32 %v891_v18, %v681_v19 }
 0x167   : > { %v911_v28 = vadd.f32 %v910_v20, %v892_v21 }
 0x169   : > { %v921_v34 = vmax.f32 %v911_v28, 0.0 }
 0x16a   : > { %v853_v22 = vpop.f32.mrf.mxu2 }
 0x16b   : > { %v872_v24 = vpop.f32.mrf.mxu3  ;;  %v854_v32 = vadd.f32 %v853_v22, %v680_v23 }
 0x16c   : > { %v893_v27 = vpop.f32.mrf.mxu0 }
 0x16d   : > { %v894_v29 = vadd.f32 %v893_v27, %v681_v19  ;;  %v912_v30 = vpop.f32.mrf.mxu1  ;;  %v873_v37 = vadd.f32 %v872_v24, %v854_v32  ;;  %v966_v24 = vperm.slane %v964_v17, 0 }
 0x16f   : > { %v913_v33 = vadd.f32 %v912_v30, %v894_v29  ;;  %v920_v44 = vmax.f32 %v873_v37, 0.0 }
 0x171   : > { %v923_v35 = vmax.f32 %v913_v33, 0.0 }
 0x172   : > { %v855_v36 = vpop.f32.mrf.mxu2 }
 0x173   : > { %v929_v38 = vpack.c.bf16 %v923_v35, %v921_v34  ;;  %v856_v39 = vadd.f32 %v855_v36, %v680_v23  ;;  %v874_v40 = vpop.f32.mrf.mxu3 }
 0x174   : > { %v896_v41 = vpop.f32.mrf.mxu0 }
 0x175   : > { %v875_v42 = vadd.f32 %v874_v40, %v856_v39  ;;  %v915_v43 = vpop.f32.mrf.mxu1  ;;  %1157 = vmatmul.bf16.vlgmr.msrb.gmra.mxu3 %v929_v38  ;;  %1195 = vmatmul.bf16.vlgmr.msra.gmra.mxu1 %v929_v38  ;;  %v897_v47 = vadd.f32 %v896_v41, %v681_v19 }
 0x177   : > { %v922_v45 = vmax.f32 %v875_v42, 0.0  ;;  %v916_v51 = vadd.f32 %v915_v43, %v897_v47 }
 0x179   : > { %v928_v46 = vpack.c.bf16 %v922_v45, %v920_v44  ;;  %v925_v56 = vmax.f32 %v916_v51, 0.0 }
 0x17a   : > { %v858_v48 = vpop.f32.mrf.mxu2 }
 0x17b   : > { %v877_v49 = vpop.f32.mrf.mxu3  ;;  %1138 = vmatmul.bf16.vlgmr.msrb.gmra.mxu2 %v928_v46  ;;  %1176 = vmatmul.bf16.vlgmr.msra.gmra.mxu0 %v928_v46  ;;  %v859_v54 = vadd.f32 %v858_v48, %v680_v23 }
 0x17c   : > { %v898_v50 = vpop.f32.mrf.mxu0 }
 0x17d   : > { %v899_v52 = vadd.f32 %v898_v50, %v681_v19  ;;  %v917_v53 = vpop.f32.mrf.mxu1  ;;  %v878_v59 = vadd.f32 %v877_v49, %v859_v54  ;;  %v967_v19 = vperm.slane %v964_v17, 1 }
 0x17f   : > { %v918_v55 = vadd.f32 %v917_v53, %v899_v52  ;;  %v924_v0 = vmax.f32 %v878_v59, 0.0 }
 0x181   : > { %v927_v57 = vmax.f32 %v918_v55, 0.0 }
 0x182   : > { %v860_v58 = vpop.f32.mrf.mxu2 }
 0x183   : > { %v861_v60 = vadd.f32 %v860_v58, %v680_v23  ;;  %v931_v61 = vpack.c.bf16 %v927_v57, %v925_v56  ;;  %v879_v62 = vpop.f32.mrf.mxu3 }
 0x185   : > { %v880_v63 = vadd.f32 %v879_v62, %v861_v60  ;;  %1162 = vmatmul.bf16.gmra.mxu3 %v931_v61  ;;  %1200 = vmatmul.bf16.gmra.mxu1 %v931_v61 }
 0x187   : > { %v926_v1 = vmax.f32 %v880_v63, 0.0 }
 0x189   : > { %v930_v2 = vpack.c.bf16 %v926_v1, %v924_v0  ;;  %v2120_v0 = vld [vmem:[%s2560_s8] ss:$0 sm:$0xff] }
 0x18b   : > { %1143 = vmatmul.bf16.gmra.mxu2 %v930_v2  ;;  %1181 = vmatmul.bf16.gmra.mxu0 %v930_v2 }
 0x1f2   : > { %v1196_v16 = vpop.f32.mrf.mxu1 }
 0x1f8   : > { %v1177_v18 = vpop.f32.mrf.mxu0  ;;  %v1158_v20 = vpop.f32.mrf.mxu3 }
 0x1f9   : > { %v1178_v21 = vadd.f32 %v1177_v18, %v967_v19 }
 0x1fa   : > { %v1198_v22 = vpop.f32.mrf.mxu1 }
 0x1fb   : > { %v1197_v26 = vadd.f32 %v1196_v16, %v1178_v21 }
 0x1fd   : > { %v1207_v31 = vmax.f32 %v1197_v26, 0.0 }
 0x1fe   : > { %v1139_v23 = vpop.f32.mrf.mxu2 }
 0x1ff   : > { %v1140_v28 = vadd.f32 %v1139_v23, %v966_v24 }
 0x200   : > { %v1179_v25 = vpop.f32.mrf.mxu0  ;;  %v1160_v30 = vpop.f32.mrf.mxu3 }
 0x201   : > { %v1180_v27 = vadd.f32 %v1179_v25, %v967_v19  ;;  %v1159_v34 = vadd.f32 %v1158_v20, %v1140_v28  ;;  %v1409_v25 = vstv %s1408_s29 }
 0x202   : > { %v1201_v37 = vpop.f32.mrf.mxu1 }
 0x203   : > { %v1199_v29 = vadd.f32 %v1198_v22, %v1180_v27  ;;  %v1206_v40 = vmax.f32 %v1159_v34, 0.0 }
 0x205   : > { %v1209_v32 = vmax.f32 %v1199_v29, 0.0 }
 0x206   : > { %v1141_v33 = vpop.f32.mrf.mxu2 }
 0x207   : > { %v1215_v35 = vpack.c.bf16 %v1209_v32, %v1207_v31  ;;  %v1142_v36 = vadd.f32 %v1141_v33, %v966_v24 }
 0x208   : > { %v1182_v38 = vpop.f32.mrf.mxu0  ;;  %v1163_v44 = vpop.f32.mrf.mxu3 }
 0x209   : > { %v1161_v39 = vadd.f32 %v1160_v30, %v1142_v36  ;;  %1377 = vmatmul.bf16.vlgmr.msra.gmra.mxu3 %v1215_v35  ;;  %v1183_v43 = vadd.f32 %v1182_v38, %v967_v19 }
 0x20a   : > { %v1203_v49 = vpop.f32.mrf.mxu1 }
 0x20b   : > { %v1208_v41 = vmax.f32 %v1161_v39, 0.0  ;;  %v1202_v47 = vadd.f32 %v1201_v37, %v1183_v43 }
 0x20d   : > { %v1214_v42 = vpack.c.bf16 %v1208_v41, %v1206_v40  ;;  %v1211_v52 = vmax.f32 %v1202_v47, 0.0 }
 0x20e   : > { %v1144_v45 = vpop.f32.mrf.mxu2 }
 0x20f   : > { %1358 = vmatmul.bf16.vlgmr.msra.gmra.mxu2 %v1214_v42  ;;  %v1145_v50 = vadd.f32 %v1144_v45, %v966_v24 }
 0x210   : > { %v1184_v46 = vpop.f32.mrf.mxu0  ;;  %v1165_v58 = vpop.f32.mrf.mxu3 }
 0x211   : > { %v1185_v48 = vadd.f32 %v1184_v46, %v967_v19  ;;  %v1164_v55 = vadd.f32 %v1163_v44, %v1145_v50 }
 0x213   : > { %v1204_v51 = vadd.f32 %v1203_v49, %v1185_v48  ;;  %v1210_v60 = vmax.f32 %v1164_v55, 0.0 }
 0x215   : > { %v1213_v53 = vmax.f32 %v1204_v51, 0.0 }
 0x216   : > { %v1146_v54 = vpop.f32.mrf.mxu2 }
 0x217   : > { %v1147_v56 = vadd.f32 %v1146_v54, %v966_v24  ;;  %v1217_v57 = vpack.c.bf16 %v1213_v53, %v1211_v52 }
 0x219   : > { %v1166_v59 = vadd.f32 %v1165_v58, %v1147_v56  ;;  %1382 = vmatmul.bf16.gmra.mxu3 %v1217_v57 }
 0x21b   : > { %v1212_v61 = vmax.f32 %v1166_v59, 0.0 }
 0x21d   : > { %v1216_v62 = vpack.c.bf16 %v1212_v61, %v1210_v60 }
 0x21f   : > { %1363 = vmatmul.bf16.gmra.mxu2 %v1216_v62 }
 0x28c   : > { %v1378_v63 = vpop.f32.mrf.mxu3 }
 0x292   : > { %v1359_v1 = vpop.f32.mrf.mxu2 }
 0x293   : > { %v1360_v2 = vadd.f32 %v2120_v0, %v1359_v1 }
 0x294   : > { %v1380_v6 = vpop.f32.mrf.mxu3 }
 0x295   : > { %v1379_v3 = vadd.f32 %v1378_v63, %v1360_v2 }
 0x297   : > { %v1388_v5 = vmax.f32 %v1379_v3, 0.0 }
 0x299   : > { %v1396_v7 = vmul.f32 %v2121_v4, %v1388_v5 }
 0x29a   : > { %v1361_v8 = vpop.f32.mrf.mxu2 }
 0x29b   : > { %v1362_v9 = vadd.f32 %v2120_v0, %v1361_v8  ;;  %1400 = vadd.xlane.f32.xlu0 %v1396_v7 }
 0x29c   : > { %v1383_v13 = vpop.f32.mrf.mxu3 }
 0x29d   : > { %v1381_v10 = vadd.f32 %v1380_v6, %v1362_v9 }
 0x29f   : > { %v1389_v11 = vmax.f32 %v1381_v10, 0.0 }
 0x2a1   : > { %v1397_v12 = vmul.f32 %v2121_v4, %v1389_v11 }
 0x2a2   : > { %v1364_v14 = vpop.f32.mrf.mxu2 }
 0x2a3   : > { %v1365_v15 = vadd.f32 %v2120_v0, %v1364_v14  ;;  %1402 = vadd.xlane.f32.xlu0 %v1397_v12 }
 0x2a4   : > { %v1385_v21 = vpop.f32.mrf.mxu3 }
 0x2a5   : > { %v1384_v16 = vadd.f32 %v1383_v13, %v1365_v15 }
 0x2a7   : > { %v1390_v17 = vmax.f32 %v1384_v16, 0.0 }
 0x2a9   : > { %v1398_v18 = vmul.f32 %v2121_v4, %v1390_v17 }
 0x2aa   : > { %v1366_v19 = vpop.f32.mrf.mxu2 }
 0x2ab   : > { %v1367_v20 = vadd.f32 %v2120_v0, %v1366_v19  ;;  %1404 = vadd.xlane.f32.xlu1 %v1398_v18 }
 0x2ad   : > { %v1386_v22 = vadd.f32 %v1385_v21, %v1367_v20 }
 0x2af   : > { %v1391_v23 = vmax.f32 %v1386_v22, 0.0 }
 0x2b1   : > { %v1399_v24 = vmul.f32 %v2121_v4, %v1391_v23 }
 0x2b3   : > { %1406 = vadd.xlane.f32.xlu1 %v1399_v24 }
 0x30e   : > { %v1401_v26 = vpop.xlane.xlu0 %1400 }
 0x30f   : > { %v1410_v27 = vadd.f32 %v1409_v25, %v1401_v26 }
 0x311   : > { %1415 = vst.msk [vmem:[%s476_s23] sm:$0xff] %vm1414_vm0, %v1410_v27 }
 0x316   : > { %v1403_v28 = vpop.xlane.xlu0 %1402 }
 0x317   : > { %v1411_v29 = vadd.f32 %v1409_v25, %v1403_v28 }
 0x319   : > { %1416 = vst.msk [vmem:[%s476_s23 + $0x8] sm:$0xff] %vm1414_vm0, %v1411_v29 }
 0x31e   : > { %v1405_v30 = vpop.xlane.xlu1 %1404 }
 0x31f   : > { %v1412_v31 = vadd.f32 %v1409_v25, %v1405_v30 }
 0x321   : > { %1417 = vst.msk [vmem:[%s476_s23 + $0x10] sm:$0xff] %vm1414_vm0, %v1412_v31 }
 0x326   : > { %v1407_v32 = vpop.xlane.xlu1 %1406 }
 0x327   : > { %v1413_v33 = vadd.f32 %v1409_v25, %v1407_v32 }
 0x329   : > { %1418 = vst.msk [vmem:[%s476_s23 + $0x18] sm:$0xff] %vm1414_vm0, %v1413_v33 }
 0x32a PF: > { %p24_p4 = scmp.ge.s32.totalorder %s2457_s26, 4   ;;  %s2577_s19 = smov %s2306_s20 }
 0x32b   : > { %s2578_s20 = smov %s2310_s21  ;;  %s2579_s21 = smov %s2466_s16 }
 0x32c   : > { %s2580_s22 = smov %s2457_s26  ;;  %26 = sbr.rel (!%p24_p4) target bundleno = 8 (0x8), region = 120 }
 0x331   :  { %1441 = vsyncpa [#allocation4], 1 }
 0x332   :  { %1443 = vsyncpa [#allocation4 + $0x1], 1 }
 0x333   :  { %1444 = vsyncpa [#allocation6], 1 }
 0x334   :  { %1445 = vsyncpa [#allocation9], 1 }

</bundles_post_ra>
